<compile_context>
chip_gen: v7x
topology: tpu7x:2x2x1
jax: 0.10.0
libtpu: 0.0.40
codegen_flags: <defaults>
</compile_context>

<pallas_src>
import jax
import jax.numpy as jnp
from jax import lax
from jax.experimental import pallas as pl
from jax.experimental.pallas import tpu as pltpu

EPS = 1e-5
# Matmul operand dtype.  jnp.bfloat16 gives ~2-3x MXU throughput on v5e/v6e/v7x
# (accumulation stays f32) but would exceed the 2e-4 test tolerance, so the
# default stays f32.
MATMUL_DTYPE = jnp.float32


def double_conv_kernel(x1_ref, wb1_ref, g1_ref, b1_ref, G1_ref, Gt1_ref,
                       wb2_ref, g2_ref, b2_ref, G2_ref, Gt2_ref,
                       sup_ref, sdn_ref, o_ref):
    # x1_ref : (N*H, 3*W*Cin)        wrapper-side im2col of the H-padded input
    # wb*_ref: (3*W*Ci_s, W*Co_s)    block-banded conv weights (W-pad folded in)
    # g*,b*  : (1, C)                BatchNorm gamma / beta
    # G*,Gt* : (W*C, C) / (C, W*C)   lane-group <-> channel reduce/broadcast
    # sup/sdn: (N*H, N*H)            0/1 row-shift matrices (image-boundary aware)
    # o_ref  : (N*H, W*Cout)         lane-dense output
    rows = o_ref.shape[0]
    Cout = g2_ref.shape[1]
    W = o_ref.shape[1] // Cout
    inv_cnt = 1.0 / float(rows * W)          # 1 / (N*H*W) elements per channel

    def mm(a, b):
        return jnp.dot(a.astype(MATMUL_DTYPE), b.astype(MATMUL_DTYPE),
                       preferred_element_type=jnp.float32)

    def bn_relu(acc, g, b, G, Gt):
        # one-pass training-mode BN stats folded into per-channel scale/shift
        # (E[x^2]-E[x]^2 in f32; fine for normalized inputs, see notes)
        s1 = jnp.sum(acc, axis=0, keepdims=True)            # (1, W*C)
        s2 = jnp.sum(acc * acc, axis=0, keepdims=True)       # (1, W*C)
        mean = jnp.dot(s1, G, preferred_element_type=jnp.float32) * inv_cnt
        ex2 = jnp.dot(s2, G, preferred_element_type=jnp.float32) * inv_cnt
        var = jnp.maximum(ex2 - mean * mean, 0.0)             # biased variance
        scale_c = g * lax.rsqrt(var + EPS)                    # (1, C)
        shift_c = b - mean * scale_c
        scale = jnp.dot(scale_c, Gt, preferred_element_type=jnp.float32)
        shift = jnp.dot(shift_c, Gt, preferred_element_type=jnp.float32)
        return jnp.maximum(acc * scale + shift, 0.0)          # (rows, W*C)

    # ---- stage 1: one deep matmul (K = 3*W*Cin) -> BN -> ReLU --------------
    y1 = bn_relu(mm(x1_ref[...], wb1_ref[...]),
                 g1_ref[...], b1_ref[...], G1_ref[...], Gt1_ref[...])

    # ---- stage 2: dy row-shifts as tiny 0/1 matmuls (zero at per-image H
    #      borders), lane-axis concat, one deep matmul (K = 3*W*Cmid) ---------
    y_up = jnp.dot(sup_ref[...], y1, preferred_element_type=jnp.float32)
    y_dn = jnp.dot(sdn_ref[...], y1, preferred_element_type=jnp.float32)
    x2 = jnp.concatenate([y_up, y1, y_dn], axis=-1)           # (rows, 3*W*Cmid)
    y2 = bn_relu(mm(x2, wb2_ref[...]),
                 g2_ref[...], b2_ref[...], G2_ref[...], Gt2_ref[...])

    o_ref[...] = y2.astype(o_ref.dtype)


def _band_weights(w_oihw, W):
    """OIHW 3x3 weights -> (3*W*Ci, W*Co) block-banded, W-padding folded in.

    wb[dy*W*Ci + wi*Ci + ci, w*Co + co] = w_oihw[co, ci, dy, wi-w+1]
    for wi = w + dx - 1 in [0, W); off-edge taps are left zero, so a
    row-flattened (.., W*Ci) activation row times wb implements the 3x3 conv
    in the W (dx) direction with implicit zero padding.
    """
    Co, Ci, KH, KW = w_oihw.shape
    wt = jnp.transpose(w_oihw, (2, 3, 1, 0)).astype(jnp.float32)   # (KH,KW,Ci,Co)
    wb = jnp.zeros((KH, W * Ci, W * Co), jnp.float32)
    for w in range(W):
        for dx in range(KW):
            wi = w + dx - 1
            if 0 <= wi < W:
                wb = wb.at[:, wi * Ci:(wi + 1) * Ci,
                              w * Co:(w + 1) * Co].set(wt[:, dx])
    return wb.reshape(KH * W * Ci, W * Co)


def _group_mats(W, C):
    # G : (W*C, C)  sums the W lane-groups of a (.., W*C) row into per-channel
    # Gt: (C, W*C)  broadcasts per-channel values back across the W lane-groups
    r = lax.broadcasted_iota(jnp.int32, (W * C, C), 0) % C
    c = lax.broadcasted_iota(jnp.int32, (W * C, C), 1)
    G = (r == c).astype(jnp.float32)
    return G, G.T


def _shift_mats(N, H):
    # 0/1 matrices shifting row-flattened (N*H, .) activations by +-1 image
    # row, with zeros at per-image H boundaries (= conv zero padding in H).
    rows = N * H
    ridx = jnp.arange(rows)
    h = ridx % H
    i = ridx[:, None]
    j = ridx[None, :]
    s_up = ((j == i - 1) & (h[:, None] != 0)).astype(jnp.float32)
    s_dn = ((j == i + 1) & (h[:, None] != H - 1)).astype(jnp.float32)
    return s_up, s_dn


@jax.jit
def double_conv(x_nchw, w1_oihw, g1, b1, w2_oihw, g2, b2):
    N, Cin, H, W = x_nchw.shape
    Cmid = w1_oihw.shape[0]
    Cout = w2_oihw.shape[0]
    rows = N * H

    # NCHW -> H-padded NHWC rows, then im2col over the 3 kernel rows (dy) so
    # the kernel's stage-1 read is a single aligned lane-dense load.
    x_nhwc = jnp.transpose(x_nchw, (0, 2, 3, 1)).astype(jnp.float32)  # (N,H,W,Ci)
    x_hpad = jnp.pad(x_nhwc, ((0, 0), (1, 1), (0, 0), (0, 0)))        # (N,H+2,W,Ci)
    x_rows = x_hpad.reshape(N, H + 2, W * Cin)
    x1 = jnp.concatenate([x_rows[:, dy:dy + H, :] for dy in range(3)],
                         axis=-1).reshape(rows, 3 * W * Cin)

    wb1 = _band_weights(w1_oihw, W)          # (3*W*Cin,  W*Cmid)
    wb2 = _band_weights(w2_oihw, W)          # (3*W*Cmid, W*Cout)
    G1, Gt1 = _group_mats(W, Cmid)
    G2, Gt2 = _group_mats(W, Cout)
    s_up, s_dn = _shift_mats(N, H)
    g1_ = g1.reshape(1, Cmid).astype(jnp.float32)
    b1_ = b1.reshape(1, Cmid).astype(jnp.float32)
    g2_ = g2.reshape(1, Cout).astype(jnp.float32)
    b2_ = b2.reshape(1, Cout).astype(jnp.float32)

    full = lambda shape: pl.BlockSpec(shape, lambda i: (0,) * len(shape))

    out_rows = pl.pallas_call(
        double_conv_kernel,
        out_shape=jax.ShapeDtypeStruct((rows, W * Cout), jnp.float32),
        grid=(1,),
        in_specs=[
            full((rows, 3 * W * Cin)),
            full((3 * W * Cin, W * Cmid)),
            full((1, Cmid)), full((1, Cmid)),
            full((W * Cmid, Cmid)), full((Cmid, W * Cmid)),
            full((3 * W * Cmid, W * Cout)),
            full((1, Cout)), full((1, Cout)),
            full((W * Cout, Cout)), full((Cout, W * Cout)),
            full((rows, rows)), full((rows, rows)),
        ],
        out_specs=full((rows, W * Cout)),
        compiler_params=pltpu.CompilerParams(
            dimension_semantics=("arbitrary",)),
    )(x1, wb1, g1_, b1_, G1, Gt1, wb2, g2_, b2_, G2, Gt2, s_up, s_dn)

    # lane-dense kernel output back to NCHW
    return out_rows.reshape(N, H, W, Cout).transpose(0, 3, 1, 2)


def reference(x, w1, g1, b1, w2, g2, b2):
    """Pure-JAX NCHW reference matching PyTorch training-mode DoubleConv."""
    def conv(x, w):
        return lax.conv_general_dilated(
            x, w, window_strides=(1, 1), padding="SAME",
            dimension_numbers=("NCHW", "OIHW", "NCHW"))

    def bn_relu(y, g, b):
        mean = jnp.mean(y, axis=(0, 2, 3), keepdims=True)
        var = jnp.mean((y - mean) ** 2, axis=(0, 2, 3), keepdims=True)
        yhat = (y - mean) / jnp.sqrt(var + EPS)
        return jnp.maximum(yhat * g[None, :, None, None]
                           + b[None, :, None, None], 0.0)

    y = bn_relu(conv(x, w1), g1, b1)
    return bn_relu(conv(y, w2), g2, b2)


if __name__ == "__main__":
    N, Cin, Cout, H, W = 2, 4, 8, 16, 16
    Cmid = Cout  # mid_channels defaults to out_channels

    key = jax.random.PRNGKey(0)
    kx, kw1, kw2, kg1, kb1, kg2, kb2 = jax.random.split(key, 7)

    x = jax.random.normal(kx, (N, Cin, H, W), jnp.float32)
    w1 = jax.random.normal(kw1, (Cmid, Cin, 3, 3), jnp.float32) * 0.2
    w2 = jax.random.normal(kw2, (Cout, Cmid, 3, 3), jnp.float32) * 0.2
    g1 = 1.0 + 0.1 * jax.random.normal(kg1, (Cmid,), jnp.float32)
    b1 = 0.1 * jax.random.normal(kb1, (Cmid,), jnp.float32)
    g2 = 1.0 + 0.1 * jax.random.normal(kg2, (Cout,), jnp.float32)
    b2 = 0.1 * jax.random.normal(kb2, (Cout,), jnp.float32)

    out = double_conv(x, w1, g1, b1, w2, g2, b2)
    out = jax.block_until_ready(out)

    ref = reference(x, w1, g1, b1, w2, g2, b2)
    assert out.shape == (N, Cout, H, W), out.shape
    assert jnp.allclose(out, ref, atol=2e-4, rtol=2e-4), (
        float(jnp.max(jnp.abs(out - ref))))

    print("KERNEL_OK")
</pallas_src>

<mosaic_0001>
module attributes {stable_mosaic.version = 11 : i64} {
  func.func @double_conv_kernel(%arg0: i32, %arg1: memref<32x192xf32, #tpu.memory_space<vmem>>, %arg2: memref<192x128xf32, #tpu.memory_space<vmem>>, %arg3: memref<1x8xf32, #tpu.memory_space<vmem>>, %arg4: memref<1x8xf32, #tpu.memory_space<vmem>>, %arg5: memref<128x8xf32, #tpu.memory_space<vmem>>, %arg6: memref<8x128xf32, #tpu.memory_space<vmem>>, %arg7: memref<384x128xf32, #tpu.memory_space<vmem>>, %arg8: memref<1x8xf32, #tpu.memory_space<vmem>>, %arg9: memref<1x8xf32, #tpu.memory_space<vmem>>, %arg10: memref<128x8xf32, #tpu.memory_space<vmem>>, %arg11: memref<8x128xf32, #tpu.memory_space<vmem>>, %arg12: memref<32x32xf32, #tpu.memory_space<vmem>>, %arg13: memref<32x32xf32, #tpu.memory_space<vmem>>, %arg14: memref<32x128xf32, #tpu.memory_space<vmem>>) attributes {dimension_semantics = [#tpu.dimension_semantics<arbitrary>], iteration_bounds = array<i64: 1>, scalar_prefetch = 0 : i64, scratch_operands = 0 : i64, tpu.core_type = #tpu.core_type<tc>, window_params = [{pipeline_mode = #tpu.pipeline_mode<synchronous>, transform_indices = @transform_0, window_bounds = array<i64: 32, 192>}, {pipeline_mode = #tpu.pipeline_mode<synchronous>, transform_indices = @transform_1, window_bounds = array<i64: 192, 128>}, {pipeline_mode = #tpu.pipeline_mode<synchronous>, transform_indices = @transform_2, window_bounds = array<i64: 1, 8>}, {pipeline_mode = #tpu.pipeline_mode<synchronous>, transform_indices = @transform_3, window_bounds = array<i64: 1, 8>}, {pipeline_mode = #tpu.pipeline_mode<synchronous>, transform_indices = @transform_4, window_bounds = array<i64: 128, 8>}, {pipeline_mode = #tpu.pipeline_mode<synchronous>, transform_indices = @transform_5, window_bounds = array<i64: 8, 128>}, {pipeline_mode = #tpu.pipeline_mode<synchronous>, transform_indices = @transform_6, window_bounds = array<i64: 384, 128>}, {pipeline_mode = #tpu.pipeline_mode<synchronous>, transform_indices = @transform_7, window_bounds = array<i64: 1, 8>}, {pipeline_mode = #tpu.pipeline_mode<synchronous>, transform_indices = @transform_8, window_bounds = array<i64: 1, 8>}, {pipeline_mode = #tpu.pipeline_mode<synchronous>, transform_indices = @transform_9, window_bounds = array<i64: 128, 8>}, {pipeline_mode = #tpu.pipeline_mode<synchronous>, transform_indices = @transform_10, window_bounds = array<i64: 8, 128>}, {pipeline_mode = #tpu.pipeline_mode<synchronous>, transform_indices = @transform_11, window_bounds = array<i64: 32, 32>}, {pipeline_mode = #tpu.pipeline_mode<synchronous>, transform_indices = @transform_12, window_bounds = array<i64: 32, 32>}, {pipeline_mode = #tpu.pipeline_mode<synchronous>, transform_indices = @transform_13, window_bounds = array<i64: 32, 128>}]} {
    %c0 = arith.constant 0 : index
    %c0_0 = arith.constant 0 : index
    %0 = vector.load %arg1[%c0, %c0_0] : memref<32x192xf32, #tpu.memory_space<vmem>>, vector<32x192xf32>
    %c0_1 = arith.constant 0 : index
    %c0_2 = arith.constant 0 : index
    %1 = vector.load %arg2[%c0_1, %c0_2] : memref<192x128xf32, #tpu.memory_space<vmem>>, vector<192x128xf32>
    %cst = arith.constant dense<0.000000e+00> : vector<32x128xf32>
    %2 = tpu.matmul %0, %1, %cst {dimension_numbers = #tpu.dot_dimension_numbers<[1], [0], [0], [1], [0, 0, 1, 1], [], []>} : vector<32x192xf32>, vector<192x128xf32>, vector<32x128xf32> -> vector<32x128xf32>
    %c0_3 = arith.constant 0 : index
    %c0_4 = arith.constant 0 : index
    %3 = vector.load %arg3[%c0_3, %c0_4] : memref<1x8xf32, #tpu.memory_space<vmem>>, vector<1x8xf32>
    %c0_5 = arith.constant 0 : index
    %c0_6 = arith.constant 0 : index
    %4 = vector.load %arg4[%c0_5, %c0_6] : memref<1x8xf32, #tpu.memory_space<vmem>>, vector<1x8xf32>
    %c0_7 = arith.constant 0 : index
    %c0_8 = arith.constant 0 : index
    %5 = vector.load %arg5[%c0_7, %c0_8] : memref<128x8xf32, #tpu.memory_space<vmem>>, vector<128x8xf32>
    %c0_9 = arith.constant 0 : index
    %c0_10 = arith.constant 0 : index
    %6 = vector.load %arg6[%c0_9, %c0_10] : memref<8x128xf32, #tpu.memory_space<vmem>>, vector<8x128xf32>
    %cst_11 = arith.constant dense<0.000000e+00> : vector<128xf32>
    %7 = vector.multi_reduction <add>, %2, %cst_11 [0] : vector<32x128xf32> to vector<128xf32>
    %8 = vector.shape_cast %7 : vector<128xf32> to vector<1x128xf32>
    %9 = arith.mulf %2, %2 : vector<32x128xf32>
    %cst_12 = arith.constant dense<0.000000e+00> : vector<128xf32>
    %10 = vector.multi_reduction <add>, %9, %cst_12 [0] : vector<32x128xf32> to vector<128xf32>
    %11 = vector.shape_cast %10 : vector<128xf32> to vector<1x128xf32>
    %cst_13 = arith.constant dense<0.000000e+00> : vector<1x8xf32>
    %12 = tpu.matmul %8, %5, %cst_13 {dimension_numbers = #tpu.dot_dimension_numbers<[1], [0], [0], [1], [0, 0, 1, 1], [], []>} : vector<1x128xf32>, vector<128x8xf32>, vector<1x8xf32> -> vector<1x8xf32>
    %cst_14 = arith.constant 0.001953125 : f32
    %13 = vector.broadcast %cst_14 : f32 to vector<1x8xf32>
    %14 = arith.mulf %12, %13 : vector<1x8xf32>
    %cst_15 = arith.constant dense<0.000000e+00> : vector<1x8xf32>
    %15 = tpu.matmul %11, %5, %cst_15 {dimension_numbers = #tpu.dot_dimension_numbers<[1], [0], [0], [1], [0, 0, 1, 1], [], []>} : vector<1x128xf32>, vector<128x8xf32>, vector<1x8xf32> -> vector<1x8xf32>
    %cst_16 = arith.constant 0.001953125 : f32
    %16 = vector.broadcast %cst_16 : f32 to vector<1x8xf32>
    %17 = arith.mulf %15, %16 : vector<1x8xf32>
    %18 = arith.mulf %14, %14 : vector<1x8xf32>
    %19 = arith.subf %17, %18 : vector<1x8xf32>
    %cst_17 = arith.constant 0.000000e+00 : f32
    %20 = vector.broadcast %cst_17 : f32 to vector<1x8xf32>
    %21 = arith.maximumf %19, %20 : vector<1x8xf32>
    %cst_18 = arith.constant 9.99999974E-6 : f32
    %22 = vector.broadcast %cst_18 : f32 to vector<1x8xf32>
    %23 = arith.addf %21, %22 : vector<1x8xf32>
    %24 = math.rsqrt %23 : vector<1x8xf32>
    %25 = arith.mulf %3, %24 : vector<1x8xf32>
    %26 = arith.mulf %14, %25 : vector<1x8xf32>
    %27 = arith.subf %4, %26 : vector<1x8xf32>
    %cst_19 = arith.constant dense<0.000000e+00> : vector<1x128xf32>
    %28 = tpu.matmul %25, %6, %cst_19 {dimension_numbers = #tpu.dot_dimension_numbers<[1], [0], [0], [1], [0, 0, 1, 1], [], []>} : vector<1x8xf32>, vector<8x128xf32>, vector<1x128xf32> -> vector<1x128xf32>
    %cst_20 = arith.constant dense<0.000000e+00> : vector<1x128xf32>
    %29 = tpu.matmul %27, %6, %cst_20 {dimension_numbers = #tpu.dot_dimension_numbers<[1], [0], [0], [1], [0, 0, 1, 1], [], []>} : vector<1x8xf32>, vector<8x128xf32>, vector<1x128xf32> -> vector<1x128xf32>
    %30 = vector.broadcast %28 : vector<1x128xf32> to vector<32x128xf32>
    %31 = arith.mulf %2, %30 : vector<32x128xf32>
    %32 = vector.broadcast %29 : vector<1x128xf32> to vector<32x128xf32>
    %33 = arith.addf %31, %32 : vector<32x128xf32>
    %cst_21 = arith.constant 0.000000e+00 : f32
    %34 = vector.broadcast %cst_21 : f32 to vector<32x128xf32>
    %35 = arith.maximumf %33, %34 : vector<32x128xf32>
    %c0_22 = arith.constant 0 : index
    %c0_23 = arith.constant 0 : index
    %36 = vector.load %arg12[%c0_22, %c0_23] : memref<32x32xf32, #tpu.memory_space<vmem>>, vector<32x32xf32>
    %cst_24 = arith.constant dense<0.000000e+00> : vector<32x128xf32>
    %37 = tpu.matmul %36, %35, %cst_24 {dimension_numbers = #tpu.dot_dimension_numbers<[1], [0], [0], [1], [0, 0, 1, 1], [], []>} : vector<32x32xf32>, vector<32x128xf32>, vector<32x128xf32> -> vector<32x128xf32>
    %c0_25 = arith.constant 0 : index
    %c0_26 = arith.constant 0 : index
    %38 = vector.load %arg13[%c0_25, %c0_26] : memref<32x32xf32, #tpu.memory_space<vmem>>, vector<32x32xf32>
    %cst_27 = arith.constant dense<0.000000e+00> : vector<32x128xf32>
    %39 = tpu.matmul %38, %35, %cst_27 {dimension_numbers = #tpu.dot_dimension_numbers<[1], [0], [0], [1], [0, 0, 1, 1], [], []>} : vector<32x32xf32>, vector<32x128xf32>, vector<32x128xf32> -> vector<32x128xf32>
    %40 = tpu.concatenate %37, %35, %39 in 1 : vector<32x128xf32>, vector<32x128xf32>, vector<32x128xf32> -> vector<32x384xf32>
    %c0_28 = arith.constant 0 : index
    %c0_29 = arith.constant 0 : index
    %41 = vector.load %arg7[%c0_28, %c0_29] : memref<384x128xf32, #tpu.memory_space<vmem>>, vector<384x128xf32>
    %cst_30 = arith.constant dense<0.000000e+00> : vector<32x128xf32>
    %42 = tpu.matmul %40, %41, %cst_30 {dimension_numbers = #tpu.dot_dimension_numbers<[1], [0], [0], [1], [0, 0, 1, 1], [], []>} : vector<32x384xf32>, vector<384x128xf32>, vector<32x128xf32> -> vector<32x128xf32>
    %c0_31 = arith.constant 0 : index
    %c0_32 = arith.constant 0 : index
    %43 = vector.load %arg8[%c0_31, %c0_32] : memref<1x8xf32, #tpu.memory_space<vmem>>, vector<1x8xf32>
    %c0_33 = arith.constant 0 : index
    %c0_34 = arith.constant 0 : index
    %44 = vector.load %arg9[%c0_33, %c0_34] : memref<1x8xf32, #tpu.memory_space<vmem>>, vector<1x8xf32>
    %c0_35 = arith.constant 0 : index
    %c0_36 = arith.constant 0 : index
    %45 = vector.load %arg10[%c0_35, %c0_36] : memref<128x8xf32, #tpu.memory_space<vmem>>, vector<128x8xf32>
    %c0_37 = arith.constant 0 : index
    %c0_38 = arith.constant 0 : index
    %46 = vector.load %arg11[%c0_37, %c0_38] : memref<8x128xf32, #tpu.memory_space<vmem>>, vector<8x128xf32>
    %cst_39 = arith.constant dense<0.000000e+00> : vector<128xf32>
    %47 = vector.multi_reduction <add>, %42, %cst_39 [0] : vector<32x128xf32> to vector<128xf32>
    %48 = vector.shape_cast %47 : vector<128xf32> to vector<1x128xf32>
    %49 = arith.mulf %42, %42 : vector<32x128xf32>
    %cst_40 = arith.constant dense<0.000000e+00> : vector<128xf32>
    %50 = vector.multi_reduction <add>, %49, %cst_40 [0] : vector<32x128xf32> to vector<128xf32>
    %51 = vector.shape_cast %50 : vector<128xf32> to vector<1x128xf32>
    %cst_41 = arith.constant dense<0.000000e+00> : vector<1x8xf32>
    %52 = tpu.matmul %48, %45, %cst_41 {dimension_numbers = #tpu.dot_dimension_numbers<[1], [0], [0], [1], [0, 0, 1, 1], [], []>} : vector<1x128xf32>, vector<128x8xf32>, vector<1x8xf32> -> vector<1x8xf32>
    %cst_42 = arith.constant 0.001953125 : f32
    %53 = vector.broadcast %cst_42 : f32 to vector<1x8xf32>
    %54 = arith.mulf %52, %53 : vector<1x8xf32>
    %cst_43 = arith.constant dense<0.000000e+00> : vector<1x8xf32>
    %55 = tpu.matmul %51, %45, %cst_43 {dimension_numbers = #tpu.dot_dimension_numbers<[1], [0], [0], [1], [0, 0, 1, 1], [], []>} : vector<1x128xf32>, vector<128x8xf32>, vector<1x8xf32> -> vector<1x8xf32>
    %cst_44 = arith.constant 0.001953125 : f32
    %56 = vector.broadcast %cst_44 : f32 to vector<1x8xf32>
    %57 = arith.mulf %55, %56 : vector<1x8xf32>
    %58 = arith.mulf %54, %54 : vector<1x8xf32>
    %59 = arith.subf %57, %58 : vector<1x8xf32>
    %cst_45 = arith.constant 0.000000e+00 : f32
    %60 = vector.broadcast %cst_45 : f32 to vector<1x8xf32>
    %61 = arith.maximumf %59, %60 : vector<1x8xf32>
    %cst_46 = arith.constant 9.99999974E-6 : f32
    %62 = vector.broadcast %cst_46 : f32 to vector<1x8xf32>
    %63 = arith.addf %61, %62 : vector<1x8xf32>
    %64 = math.rsqrt %63 : vector<1x8xf32>
    %65 = arith.mulf %43, %64 : vector<1x8xf32>
    %66 = arith.mulf %54, %65 : vector<1x8xf32>
    %67 = arith.subf %44, %66 : vector<1x8xf32>
    %cst_47 = arith.constant dense<0.000000e+00> : vector<1x128xf32>
    %68 = tpu.matmul %65, %46, %cst_47 {dimension_numbers = #tpu.dot_dimension_numbers<[1], [0], [0], [1], [0, 0, 1, 1], [], []>} : vector<1x8xf32>, vector<8x128xf32>, vector<1x128xf32> -> vector<1x128xf32>
    %cst_48 = arith.constant dense<0.000000e+00> : vector<1x128xf32>
    %69 = tpu.matmul %67, %46, %cst_48 {dimension_numbers = #tpu.dot_dimension_numbers<[1], [0], [0], [1], [0, 0, 1, 1], [], []>} : vector<1x8xf32>, vector<8x128xf32>, vector<1x128xf32> -> vector<1x128xf32>
    %70 = vector.broadcast %68 : vector<1x128xf32> to vector<32x128xf32>
    %71 = arith.mulf %42, %70 : vector<32x128xf32>
    %72 = vector.broadcast %69 : vector<1x128xf32> to vector<32x128xf32>
    %73 = arith.addf %71, %72 : vector<32x128xf32>
    %cst_49 = arith.constant 0.000000e+00 : f32
    %74 = vector.broadcast %cst_49 : f32 to vector<32x128xf32>
    %75 = arith.maximumf %73, %74 : vector<32x128xf32>
    %c0_50 = arith.constant 0 : index
    %c0_51 = arith.constant 0 : index
    %76 = vector.load %arg14[%c0_50, %c0_51] : memref<32x128xf32, #tpu.memory_space<vmem>>, vector<32x128xf32>
    tpu.vector_store %arg14[%c0_50, %c0_51], %75 {strides = array<i32>} : memref<32x128xf32, #tpu.memory_space<vmem>>, vector<32x128xf32>,
    return
  }
  func.func @transform_0(%arg0: i32) -> (i32, i32) {
    %c0_i32 = arith.constant 0 : i32
    %c0_i32_0 = arith.constant 0 : i32
    %c0_i32_1 = arith.constant 0 : i32
    return %c0_i32, %c0_i32_0 : i32, i32
  }
  func.func @transform_1(%arg0: i32) -> (i32, i32) {
    %c0_i32 = arith.constant 0 : i32
    %c0_i32_0 = arith.constant 0 : i32
    %c0_i32_1 = arith.constant 0 : i32
    return %c0_i32, %c0_i32_0 : i32, i32
  }
  func.func @transform_2(%arg0: i32) -> (i32, i32) {
    %c0_i32 = arith.constant 0 : i32
    %c0_i32_0 = arith.constant 0 : i32
    %c0_i32_1 = arith.constant 0 : i32
    return %c0_i32, %c0_i32_0 : i32, i32
  }
  func.func @transform_3(%arg0: i32) -> (i32, i32) {
    %c0_i32 = arith.constant 0 : i32
    %c0_i32_0 = arith.constant 0 : i32
    %c0_i32_1 = arith.constant 0 : i32
    return %c0_i32, %c0_i32_0 : i32, i32
  }
  func.func @transform_4(%arg0: i32) -> (i32, i32) {
    %c0_i32 = arith.constant 0 : i32
    %c0_i32_0 = arith.constant 0 : i32
    %c0_i32_1 = arith.constant 0 : i32
    return %c0_i32, %c0_i32_0 : i32, i32
  }
  func.func @transform_5(%arg0: i32) -> (i32, i32) {
    %c0_i32 = arith.constant 0 : i32
    %c0_i32_0 = arith.constant 0 : i32
    %c0_i32_1 = arith.constant 0 : i32
    return %c0_i32, %c0_i32_0 : i32, i32
  }
  func.func @transform_6(%arg0: i32) -> (i32, i32) {
    %c0_i32 = arith.constant 0 : i32
    %c0_i32_0 = arith.constant 0 : i32
    %c0_i32_1 = arith.constant 0 : i32
    return %c0_i32, %c0_i32_0 : i32, i32
  }
  func.func @transform_7(%arg0: i32) -> (i32, i32) {
    %c0_i32 = arith.constant 0 : i32
    %c0_i32_0 = arith.constant 0 : i32
    %c0_i32_1 = arith.constant 0 : i32
    return %c0_i32, %c0_i32_0 : i32, i32
  }
  func.func @transform_8(%arg0: i32) -> (i32, i32) {
    %c0_i32 = arith.constant 0 : i32
    %c0_i32_0 = arith.constant 0 : i32
    %c0_i32_1 = arith.constant 0 : i32
    return %c0_i32, %c0_i32_0 : i32, i32
  }
  func.func @transform_9(%arg0: i32) -> (i32, i32) {
    %c0_i32 = arith.constant 0 : i32
    %c0_i32_0 = arith.constant 0 : i32
    %c0_i32_1 = arith.constant 0 : i32
    return %c0_i32, %c0_i32_0 : i32, i32
  }
  func.func @transform_10(%arg0: i32) -> (i32, i32) {
    %c0_i32 = arith.constant 0 : i32
    %c0_i32_0 = arith.constant 0 : i32
    %c0_i32_1 = arith.constant 0 : i32
    return %c0_i32, %c0_i32_0 : i32, i32
  }
  func.func @transform_11(%arg0: i32) -> (i32, i32) {
    %c0_i32 = arith.constant 0 : i32
    %c0_i32_0 = arith.constant 0 : i32
    %c0_i32_1 = arith.constant 0 : i32
    return %c0_i32, %c0_i32_0 : i32, i32
  }
  func.func @transform_12(%arg0: i32) -> (i32, i32) {
    %c0_i32 = arith.constant 0 : i32
    %c0_i32_0 = arith.constant 0 : i32
    %c0_i32_1 = arith.constant 0 : i32
    return %c0_i32, %c0_i32_0 : i32, i32
  }
  func.func @transform_13(%arg0: i32) -> (i32, i32) {
    %c0_i32 = arith.constant 0 : i32
    %c0_i32_0 = arith.constant 0 : i32
    %c0_i32_1 = arith.constant 0 : i32
    return %c0_i32, %c0_i32_0 : i32, i32
  }
}

</mosaic_0001>

<bundles_post_ra>
// kernel: double_conv.1
= control target key start
LH: loop header
LB: loop body
LE: loop exit
PB: predicated region body
PF: predicated region fallthrough
CT: control target
= control target key end

     0   :  { %v1935_v0 = vmov 0.0|0.0   ;;  %vm76_vm0 = vcmask 523264   ;;  %vm1936_vm1 = vmmov 0   ;;  %vm365_vm2 = vcmask 64512   ;;  %s2552_s1 = inlined_call_operand.vmem [shape: f32[192,128], index: 1, kind: input, shape index: {}]   ;;  %s2553_s0 = inlined_call_operand.vmem [shape: f32[32,192], index: 0, kind: input, shape index: {}]   ;;  %s2554_s4 = inlined_call_operand.vmem [shape: f32[128,8], index: 4, kind: input, shape index: {}, may-alias: {4,9}]   ;;  %s2555_s5 = inlined_call_operand.vmem [shape: f32[8,128], index: 5, kind: input, shape index: {}, may-alias: {5,10}]   ;;  %s2556_s2 = inlined_call_operand.vmem [shape: f32[1,8], index: 2, kind: input, shape index: {}]   ;;  %s2557_s3 = inlined_call_operand.vmem [shape: f32[1,8], index: 3, kind: input, shape index: {}]   ;;  %s2558_s11 = inlined_call_operand.vmem [shape: f32[32,32], index: 11, kind: input, shape index: {}]   ;;  %s2559_s12 = inlined_call_operand.vmem [shape: f32[32,32], index: 12, kind: input, shape index: {}]   ;;  %s2560_s6 = inlined_call_operand.vmem [shape: f32[384,128], index: 6, kind: input, shape index: {}]   ;;  %s2561_s9 = inlined_call_operand.vmem [shape: f32[128,8], index: 9, kind: input, shape index: {}, may-alias: {4,9}]   ;;  %s2562_s10 = inlined_call_operand.vmem [shape: f32[8,128], index: 10, kind: input, shape index: {}, may-alias: {5,10}]   ;;  %s2563_s7 = inlined_call_operand.vmem [shape: f32[1,8], index: 7, kind: input, shape index: {}]   ;;  %s2564_s8 = inlined_call_operand.vmem [shape: f32[1,8], index: 8, kind: input, shape index: {}]   ;;  %s2565_s13 = inlined_call_operand.vmem [shape: f32[32,128], index: 13, kind: output, shape index: {}]  }
   0x1   :  { %1716 = vmatprep.subr.bf16.mxu0 %v1935_v0  ;;  %v52_v1 = vld [vmem:[%s2552_s1] sm:$0xff]  ;;  %v53_v2 = vld [vmem:[%s2552_s1 + $0x8] sm:$0xff]  ;;  %v54_v3 = vld [vmem:[%s2552_s1 + $0x10] sm:$0xff]  ;;  %1752 = vmatprep.subr.bf16.mxu1 %v1935_v0  ;;  %vm536_vm3 = vcmask 261120  }
   0x2   :  { %v1717_v4 = vpack.c.bf16 %v53_v2, %v52_v1  ;;  %v55_v5 = vld [vmem:[%s2552_s1 + $0x18] sm:$0xff]  ;;  %v56_v7 = vld [vmem:[%s2552_s1 + $0x20] sm:$0xff]  ;;  %v57_v8 = vld [vmem:[%s2552_s1 + $0x28] sm:$0xff] }
   0x3   :  { %v1720_v6 = vpack.c.bf16 %v55_v5, %v54_v3  ;;  %v1723_v9 = vpack.c.bf16 %v57_v8, %v56_v7  ;;  %v58_v10 = vld [vmem:[%s2552_s1 + $0x30] sm:$0xff]  ;;  %v59_v11 = vld [vmem:[%s2552_s1 + $0x38] sm:$0xff]  ;;  %v45_v12 = vld [vmem:[%s2553_s0 + $0x8] sm:$0xff] }
   0x4   :  { %1718 = vmatpush1.bf16.msra.mxu0 %v1717_v4  ;;  %1318 = vmatprep.mubr.msk.f32.mxu0 %vm76_vm0, %v45_v12  ;;  %v176_v13 = vld [vmem:[%s2554_s4] sm:$0xff]  ;;  %v1726_v14 = vpack.c.bf16 %v59_v11, %v58_v10  ;;  %v177_v15 = vld [vmem:[%s2554_s4 + $0x8] sm:$0xff]  ;;  %v178_v16 = vld [vmem:[%s2554_s4 + $0x10] sm:$0xff] }
   0x5   :  { %1719 = vmatprep.subr.bf16.mxu0 %v1935_v0  ;;  %v179_v17 = vld [vmem:[%s2554_s4 + $0x18] sm:$0xff]  ;;  %v60_v18 = vld [vmem:[%s2552_s1 + $0x40] sm:$0xff]  ;;  %v61_v19 = vld [vmem:[%s2552_s1 + $0x48] sm:$0xff]  ;;  %v2059_v20 = vpack.c.bf16 %v177_v15, %v176_v13 }
   0x6   :  { %v2062_v21 = vpack.c.bf16 %v179_v17, %v178_v16  ;;  %v1729_v22 = vpack.c.bf16 %v61_v19, %v60_v18  ;;  %v62_v23 = vld [vmem:[%s2552_s1 + $0x50] sm:$0xff]  ;;  %v63_v24 = vld [vmem:[%s2552_s1 + $0x58] sm:$0xff]  ;;  %v64_v26 = vld [vmem:[%s2552_s1 + $0x60] sm:$0xff] }
   0x7   :  { %1754 = vmatpush3.bf16.msra.mxu1 %v2059_v20  ;;  %v1732_v25 = vpack.c.bf16 %v63_v24, %v62_v23  ;;  %v65_v27 = vld [vmem:[%s2552_s1 + $0x68] sm:$0xff]  ;;  %v66_v29 = vld [vmem:[%s2552_s1 + $0x70] sm:$0xff]  ;;  %v67_v30 = vld [vmem:[%s2552_s1 + $0x78] sm:$0xff] }
   0x8   :  { %1721 = vmatpush1.bf16.msra.mxu0 %v1720_v6  ;;  %1755 = vmatprep.subr.bf16.mxu1 %v1935_v0  ;;  %v1735_v28 = vpack.c.bf16 %v65_v27, %v64_v26  ;;  %v1738_v31 = vpack.c.bf16 %v67_v30, %v66_v29  ;;  %v68_v32 = vld [vmem:[%s2552_s1 + $0x80] sm:$0xff]  ;;  %v69_v33 = vld [vmem:[%s2552_s1 + $0x88] sm:$0xff]  ;;  %v70_v35 = vld [vmem:[%s2552_s1 + $0x90] sm:$0xff]  ;;  %v1937_v6 = vmov 0.0  }
   0x9   :  { %1722 = vmatprep.subr.bf16.mxu0 %v1935_v0  ;;  %v1741_v34 = vpack.c.bf16 %v69_v33, %v68_v32  ;;  %v71_v36 = vld [vmem:[%s2552_s1 + $0x98] sm:$0xff]  ;;  %v72_v38 = vld [vmem:[%s2552_s1 + $0xa0] sm:$0xff]  ;;  %v73_v39 = vld [vmem:[%s2552_s1 + $0xa8] sm:$0xff]  ;;  %1522 = vmatprep.mubr.msk.f32.mxu1 %vm1936_vm1, %v1937_v6 }
   0xa   :  { %v1744_v37 = vpack.c.bf16 %v71_v36, %v70_v35  ;;  %v1747_v40 = vpack.c.bf16 %v73_v39, %v72_v38  ;;  %v74_v41 = vld [vmem:[%s2552_s1 + $0xb0] sm:$0xff]  ;;  %v75_v42 = vld [vmem:[%s2552_s1 + $0xb8] sm:$0xff]  ;;  %v44_v44 = vld [vmem:[%s2553_s0] sm:$0xff] }
   0xb   :  { %1757 = vmatpush3.bf16.msra.mxu1 %v2062_v21  ;;  %v1750_v43 = vpack.c.bf16 %v75_v42, %v74_v41  ;;  %v47_v45 = vld [vmem:[%s2553_s0 + $0x18] sm:$0xff]  ;;  %v46_v46 = vld [vmem:[%s2553_s0 + $0x10] sm:$0xff]  ;;  %v49_v47 = vld [vmem:[%s2553_s0 + $0x28] sm:$0xff] }
   0xc   :  { %1724 = vmatpush1.bf16.msra.mxu0 %v1723_v9  ;;  %1758 = vmatprep.subr.bf16.mxu1 %v1935_v0  ;;  %v48_v48 = vld [vmem:[%s2553_s0 + $0x20] sm:$0xff]  ;;  %v51_v49 = vld [vmem:[%s2553_s0 + $0x38] sm:$0xff]  ;;  %v50_v50 = vld [vmem:[%s2553_s0 + $0x30] sm:$0xff] }
   0xd   :  { %1725 = vmatprep.subr.bf16.mxu0 %v1935_v0  ;;  %v180_v51 = vld [vmem:[%s2554_s4 + $0x20] sm:$0xff]  ;;  %v181_v52 = vld [vmem:[%s2554_s4 + $0x28] sm:$0xff]  ;;  %v182_v54 = vld [vmem:[%s2554_s4 + $0x30] sm:$0xff] }
   0xe   :  { %v1759_v53 = vpack.c.bf16 %v181_v52, %v180_v51  ;;  %v183_v55 = vld [vmem:[%s2554_s4 + $0x38] sm:$0xff]  ;;  %v184_v57 = vld [vmem:[%s2554_s4 + $0x40] sm:$0xff]  ;;  %v185_v58 = vld [vmem:[%s2554_s4 + $0x48] sm:$0xff] }
   0xf   :  { %v1762_v56 = vpack.c.bf16 %v183_v55, %v182_v54  ;;  %v1765_v59 = vpack.c.bf16 %v185_v58, %v184_v57  ;;  %v186_v60 = vld [vmem:[%s2554_s4 + $0x50] sm:$0xff]  ;;  %v187_v61 = vld [vmem:[%s2554_s4 + $0x58] sm:$0xff]  ;;  %v188_v63 = vld [vmem:[%s2554_s4 + $0x60] sm:$0xff] }
  0x10   :  { %1727 = vmatpush1.bf16.msra.mxu0 %v1726_v14  ;;  %1760 = vmatpush3.bf16.msra.mxu1 %v1759_v53  ;;  %v1768_v62 = vpack.c.bf16 %v187_v61, %v186_v60  ;;  %v189_v1 = vld [vmem:[%s2554_s4 + $0x68] sm:$0xff]  ;;  %v190_v3 = vld [vmem:[%s2554_s4 + $0x70] sm:$0xff]  ;;  %v191_v4 = vld [vmem:[%s2554_s4 + $0x78] sm:$0xff] }
  0x11   :  { %1728 = vmatprep.subr.bf16.mxu0 %v1935_v0  ;;  %1761 = vmatprep.subr.bf16.mxu1 %v1935_v0  ;;  %v1771_v2 = vpack.c.bf16 %v189_v1, %v188_v63  ;;  %v1774_v5 = vpack.c.bf16 %v191_v4, %v190_v3  ;;  %v175_v51 = vld [vmem:[%s2557_s3] sm:$0x1] }
  0x12   :  { %v532_v54 = vld [vmem:[%s2558_s11] sm:$0xff] }
  0x13   :  { %v634_v55 = vld [vmem:[%s2559_s12] sm:$0xff] }
  0x14   :  { %1730 = vmatpush1.bf16.msra.mxu0 %v1729_v22  ;;  %1763 = vmatpush3.bf16.msra.mxu1 %v1762_v56 }
  0x15   :  { %1731 = vmatprep.subr.bf16.mxu0 %v1935_v0  ;;  %1764 = vmatprep.subr.bf16.mxu1 %v1935_v0 }
  0x18   :  { %1733 = vmatpush1.bf16.msra.mxu0 %v1732_v25  ;;  %1766 = vmatpush3.bf16.msra.mxu1 %v1765_v59 }
  0x19   :  { %1734 = vmatprep.subr.bf16.mxu0 %v1935_v0  ;;  %1767 = vmatprep.subr.bf16.mxu1 %v1935_v0 }
  0x1c   :  { %1736 = vmatpush1.bf16.msra.mxu0 %v1735_v28  ;;  %1769 = vmatpush3.bf16.msra.mxu1 %v1768_v62 }
  0x1d   :  { %1737 = vmatprep.subr.bf16.mxu0 %v1935_v0  ;;  %1770 = vmatprep.subr.bf16.mxu1 %v1935_v0 }
  0x20   :  { %1739 = vmatpush1.bf16.msra.mxu0 %v1738_v31  ;;  %1772 = vmatpush3.bf16.msra.mxu1 %v1771_v2 }
  0x21   :  { %1740 = vmatprep.subr.bf16.mxu0 %v1935_v0  ;;  %1773 = vmatprep.subr.bf16.mxu1 %v1935_v0 }
  0x24   :  { %1742 = vmatpush1.bf16.msra.mxu0 %v1741_v34  ;;  %1775 = vmatpush3.bf16.msra.mxu1 %v1774_v5 }
  0x25   :  { %1743 = vmatprep.subr.bf16.mxu0 %v1935_v0  ;;  %1776 = vmatprep.subr.bf16.mxu1 %v1935_v0 }
  0x28   :  { %1745 = vmatpush1.bf16.msra.mxu0 %v1744_v37  ;;  %v192_v37 = vld [vmem:[%s2555_s5] sm:$0xff] }
  0x29   :  { %1746 = vmatprep.subr.bf16.mxu0 %v1935_v0 }
  0x2c   :  { %1748 = vmatpush1.bf16.msra.mxu0 %v1747_v40 }
  0x2d   :  { %1749 = vmatprep.subr.bf16.mxu0 %v1935_v0 }
  0x30   :  { %1751 = vmatpush1.bf16.msra.mxu0 %v1750_v43 }
  0x31   :  { %1560 = vmatprep.subr.mxu0 %v1937_v6 }
  0x33   :  { %154 = vmatmul.mubr.f32.vlgmr.msra.gmra.mrb[0].mxu0 %v44_v44 }
  0x34   :  { %1319 = vmatprep.mubr.msk.f32.mxu0 %vm76_vm0, %v47_v45  ;;  %1561 = vmatpush3.msra.mxu0 %v192_v37 }
  0x35   :  { %1565 = vmatprep.subr.mxu0 %v1937_v6 }
  0x37   :  { %159 = vmatmul.mubr.f32.gmra.mrb[2].mxu0 %v46_v46 }
  0x38   :  { %1320 = vmatprep.mubr.msk.f32.mxu0 %vm76_vm0, %v49_v47 }
  0x3b   :  { %164 = vmatmul.mubr.f32.gmra.mrb[4].mxu0 %v48_v48  ;;  %v174_v48 = vld [vmem:[%s2556_s2] sm:$0x1] }
  0x3c   :  { %1321 = vmatprep.mubr.msk.f32.mxu0 %vm76_vm0, %v51_v49 }
  0x3f   :  { %169 = vmatmul.mubr.f32.gmra.mrb[6].mxu0 %v50_v50 }
  0x40   :  { %1562 = vmatprep.mubr.msk.f32.mxu0 %vm1936_vm1, %v1937_v6 }
 0x106   :  { %v2188_v7 = vpop.f32.mrb[0].mxu0 }
 0x107   :  { %v157_v8 = vpop.f32.mrb[1].mxu0  ;;  %v202_v10 = vmul.f32 %v2188_v7, %v2188_v7 }
 0x10a   :  { %v2190_v9 = vpop.f32.mrb[2].mxu0 }
 0x10b   :  { %v193_v11 = vadd.f32 %v2190_v9, %v2188_v7  ;;  %v203_v12 = vmul.f32 %v2190_v9, %v2190_v9  ;;  %v162_v13 = vpop.f32.mrb[3].mxu0 }
 0x10d   :  { %v206_v14 = vadd.f32 %v203_v12, %v202_v10 }
 0x10e   :  { %v2198_v15 = vpop.f32.mrb[4].mxu0 }
 0x10f   :  { %v194_v16 = vadd.f32 %v193_v11, %v2198_v15  ;;  %v204_v17 = vmul.f32 %v2198_v15, %v2198_v15  ;;  %v167_v18 = vpop.f32.mrb[5].mxu0 }
 0x110   :  { %v767_v18 = vld [vmem:[%s2560_s6 + $0x100] sm:$0xff] }
 0x111   :  { %v207_v19 = vadd.f32 %v206_v14, %v204_v17  ;;  %v752_v17 = vld [vmem:[%s2560_s6 + $0x88] sm:$0xff] }
 0x112   :  { %v2203_v22 = vpop.f32.mrb[6].mxu0 }
 0x113   :  { %v195_v23 = vadd.f32 %v194_v16, %v2203_v22  ;;  %v205_v24 = vmul.f32 %v2203_v22, %v2203_v22  ;;  %v172_v25 = vpop.f32.mrb[7].mxu0  ;;  %v751_v16 = vld [vmem:[%s2560_s6 + $0x80] sm:$0xff] }
 0x114   :  { %v735_v25 = vld [vmem:[%s2560_s6] sm:$0xff] }
 0x115   :  { %v196_v26 = vrot.slane %v195_v23, 4  ;;  %v208_v27 = vadd.f32 %v207_v19, %v205_v24  ;;  %v768_v19 = vld [vmem:[%s2560_s6 + $0x108] sm:$0xff] }
 0x116   :  { %v1848_v24 = vpack.c.bf16 %v768_v19, %v767_v18  ;;  %v745_v18 = vld [vmem:[%s2560_s6 + $0x50] sm:$0xff]  ;;  %v746_v19 = vld [vmem:[%s2560_s6 + $0x58] sm:$0xff] }
 0x117   :  { %v197_v28 = vadd.f32 %v196_v26, %v195_v23  ;;  %v209_v33 = vrot.slane %v208_v27, 4  ;;  %v1816_v23 = vpack.c.bf16 %v752_v17, %v751_v16  ;;  %v736_v26 = vld [vmem:[%s2560_s6 + $0x8] sm:$0xff] }
 0x119   :  { %v198_v29 = vrot.slane %v197_v28, 2  ;;  %v210_v34 = vadd.f32 %v209_v33, %v208_v27  ;;  %v753_v27 = vld [vmem:[%s2560_s6 + $0x90] sm:$0xff] }
 0x11a   :  { %v534_v33 = vld [vmem:[%s2558_s11 + $0x10] sm:$0xff] }
 0x11b   :  { %v199_v30 = vadd.f32 %v198_v29, %v197_v28  ;;  %v211_v35 = vrot.slane %v210_v34, 2  ;;  %v754_v28 = vld [vmem:[%s2560_s6 + $0x98] sm:$0xff]  ;;  %v769_v29 = vld [vmem:[%s2560_s6 + $0x110] sm:$0xff] }
 0x11d   :  { %v200_v31 = vrot.slane %v199_v30, 1 }
 0x11f   :  { %v201_v32 = vadd.f32 %v200_v31, %v199_v30  ;;  %v770_v30 = vld [vmem:[%s2560_s6 + $0x118] sm:$0xff]  ;;  %v533_v31 = vld [vmem:[%s2558_s11 + $0x8] sm:$0xff] }
 0x121   :  { %1523 = vmatmul.mubr.f32.vlgmr.msra.gmra.mrb[0].mxu1 %v201_v32  ;;  %v635_v32 = vld [vmem:[%s2559_s12 + $0x8] sm:$0xff] }
 0x122   :  { %1778 = vmatpush3.bf16.msra.mxu1 %v2059_v20  ;;  %1557 = vmatprep.mubr.msk.f32.mxu1 %vm1936_vm1, %v1937_v6  ;;  %v212_v20 = vadd.f32 %v211_v35, %v210_v34  ;;  %v636_v34 = vld [vmem:[%s2559_s12 + $0x10] sm:$0xff]  ;;  %v1818_v35 = vpack.c.bf16 %v736_v26, %v735_v25  ;;  %v779_v25 = vld [vmem:[%s2560_s6 + $0x160] sm:$0xff]  ;;  %v780_v26 = vld [vmem:[%s2560_s6 + $0x168] sm:$0xff] }
 0x123   :  { %1779 = vmatprep.subr.bf16.mxu1 %v1935_v0 }
 0x126   :  { %1781 = vmatpush3.bf16.msra.mxu1 %v2062_v21  ;;  %v213_v21 = vrot.slane %v212_v20, 1 }
 0x127   :  { %1782 = vmatprep.subr.bf16.mxu1 %v1935_v0 }
 0x128   :  { %v214_v36 = vadd.f32 %v213_v21, %v212_v20  ;;  %v1820_v20 = vpack.c.bf16 %v754_v28, %v753_v27  ;;  %v737_v21 = vld [vmem:[%s2560_s6 + $0x10] sm:$0xff]  ;;  %v1838_v27 = vpack.c.bf16 %v746_v19, %v745_v18 }
 0x12a   :  { %1784 = vmatpush3.bf16.msra.mxu1 %v1759_v53 }
 0x12b   :  { %1785 = vmatprep.subr.bf16.mxu1 %v1935_v0 }
 0x12e   :  { %1787 = vmatpush3.bf16.msra.mxu1 %v1762_v56  ;;  %v512_v56 = vlaneseq }
 0x12f   :  { %1788 = vmatprep.subr.bf16.mxu1 %v1935_v0 }
 0x130   :  { %v513_v57 = vshrl.u32 %v512_v56, 7  ;;  %v742_v56 = vld [vmem:[%s2560_s6 + $0x38] sm:$0xff] }
 0x132   :  { %1790 = vmatpush3.bf16.msra.mxu1 %v1765_v59  ;;  %v2241_v58 = vsub.s32 0, %v513_v57 }
 0x133   :  { %1791 = vmatprep.subr.bf16.mxu1 %v1935_v0 }
 0x136   :  { %1793 = vmatpush3.bf16.msra.mxu1 %v1768_v62 }
 0x137   :  { %1794 = vmatprep.subr.bf16.mxu1 %v1935_v0 }
 0x13a   :  { %1796 = vmatpush3.bf16.msra.mxu1 %v1771_v2 }
 0x13b   :  { %1797 = vmatprep.subr.bf16.mxu1 %v1935_v0 }
 0x13e   :  { %1799 = vmatpush3.bf16.msra.mxu1 %v1774_v5 }
 0x141   :  { %1558 = vmatmul.mubr.f32.vlgmr.msra.gmra.mrb[2].mxu1 %v214_v36  ;;  %v738_v36 = vld [vmem:[%s2560_s6 + $0x18] sm:$0xff] }
 0x142   :  { %1578 = vmatprep.mubr.msk.f32.mxu1 %vm536_vm3, %v532_v54 }
 0x1f4   :  { %v281_v38 = vpop.f32.mrb[0].mxu1 }
 0x1f5   :  { %v1524_v39 = vpop.f32.mrb[1].mxu1  ;;  %v285_v40 = vmul.f32 0.001953125, %v281_v38  ;;  %v755_v38 = vld [vmem:[%s2560_s6 + $0xa0] sm:$0xff] }
 0x1f6   :  { %v756_v39 = vld [vmem:[%s2560_s6 + $0xa8] sm:$0xff] }
 0x1f7   :  { %v357_v42 = vmul.f32 %v285_v40, %v285_v40 }
 0x214   :  { %v352_v41 = vpop.f32.mrb[2].mxu1 }
 0x215   :  { %v356_v43 = vmul.f32 0.001953125, %v352_v41  ;;  %v1559_v44 = vpop.f32.mrb[3].mxu1  ;;  %v772_v41 = vld [vmem:[%s2560_s6 + $0x128] sm:$0xff] }
 0x216   :  { %v1822_v44 = vpack.c.bf16 %v738_v36, %v737_v21  ;;  %v750_v21 = vld [vmem:[%s2560_s6 + $0x78] sm:$0xff] }
 0x217   :  { %v358_v45 = vsub.f32 %v356_v43, %v357_v42  ;;  %v535_v42 = vld [vmem:[%s2558_s11 + $0x18] sm:$0xff] }
 0x218   :  { %v637_v43 = vld [vmem:[%s2559_s12 + $0x18] sm:$0xff] }
 0x219   :  { %v359_v46 = vmax.f32 %v358_v45, 0.0  ;;  %v1824_v45 = vpack.c.bf16 %v756_v39, %v755_v38  ;;  %v782_v38 = vld [vmem:[%s2560_s6 + $0x178] sm:$0xff] }
 0x21b   :  { %v360_v47 = vadd.f32 1e-05, %v359_v46  ;;  %v739_v46 = vld [vmem:[%s2560_s6 + $0x20] sm:$0xff] }
 0x21d   :  { %1931 = vrsqrt.f32 %v360_v47  ;;  %v740_v47 = vld [vmem:[%s2560_s6 + $0x28] sm:$0xff] }
 0x227   :  { %v1932_v49 = vpop.eup %1931 }
 0x228   :  { %v362_v50 = vmul.f32 %v1932_v49, %v174_v48  ;;  %v757_v49 = vld [vmem:[%s2560_s6 + $0xb0] sm:$0xff] }
 0x22a   :  { %1563 = vmatmul.mubr.msk.f32.vlgmr.msra.gmra.mrb[8].mxu0 %vm365_vm2, %v362_v50  ;;  %v363_v52 = vmul.f32 %v362_v50, %v285_v40  ;;  %v771_v40 = vld [vmem:[%s2560_s6 + $0x120] sm:$0xff]  ;;  %v758_v50 = vld [vmem:[%s2560_s6 + $0xb8] sm:$0xff] }
 0x22b   :  { %1566 = vmatpush3.msra.mxu0 %v192_v37  ;;  %1567 = vmatprep.mubr.msk.f32.mxu0 %vm1936_vm1, %v1937_v6  ;;  %v1852_v37 = vpack.c.bf16 %v770_v30, %v769_v29  ;;  %v1856_v48 = vpack.c.bf16 %v772_v41, %v771_v40  ;;  %v1828_v54 = vpack.c.bf16 %v758_v50, %v757_v49  ;;  %v747_v29 = vld [vmem:[%s2560_s6 + $0x60] sm:$0xff]  ;;  %v748_v30 = vld [vmem:[%s2560_s6 + $0x68] sm:$0xff] }
 0x22c   :  { %v364_v53 = vsub.f32 %v175_v51, %v363_v52  ;;  %v773_v51 = vld [vmem:[%s2560_s6 + $0x130] sm:$0xff]  ;;  %v774_v52 = vld [vmem:[%s2560_s6 + $0x138] sm:$0xff]  ;;  %v960_v49 = vld [vmem:[%s2561_s9 + $0x28] sm:$0xff] }
 0x22d   :  { %v1860_v57 = vpack.c.bf16 %v774_v52, %v773_v51  ;;  %v961_v51 = vld [vmem:[%s2561_s9 + $0x30] sm:$0xff]  ;;  %v962_v52 = vld [vmem:[%s2561_s9 + $0x38] sm:$0xff] }
 0x22e   :  { %1568 = vmatmul.mubr.msk.f32.vlgmr.msra.gmra.mrb[10].mxu0 %vm365_vm2, %v364_v53  ;;  %v1826_v53 = vpack.c.bf16 %v740_v47, %v739_v46 }
 0x22f   :  { %1592 = vmatprep.mubr.msk.f32.mxu0 %vm536_vm3, %v634_v55  ;;  %v741_v55 = vld [vmem:[%s2560_s6 + $0x30] sm:$0xff] }
 0x2fd   :  { %v435_v59 = vpop.f32.mrb[8].mxu0 }
 0x2fe   :  { %v515_v60 = vrot.slane %v435_v59, %v2241_v58  ;;  %v1564_v61 = vpop.f32.mrb[9].mxu0  ;;  %v759_v59 = vld [vmem:[%s2560_s6 + $0xc0] sm:$0xff] }
 0x2ff   :  { %v775_v61 = vld [vmem:[%s2560_s6 + $0x140] sm:$0xff] }
 0x300   :  { %v516_v62 = vmul.f32 %v515_v60, %v2188_v7  ;;  %v517_v63 = vmul.f32 %v515_v60, %v2190_v9  ;;  %v518_v1 = vmul.f32 %v515_v60, %v2198_v15  ;;  %v519_v2 = vmul.f32 %v515_v60, %v2203_v22  ;;  %v760_v60 = vld [vmem:[%s2560_s6 + $0xc8] sm:$0xff] }
 0x301   :  { %v508_v3 = vpop.f32.mrb[10].mxu0 }
 0x302   :  { %v523_v4 = vrot.slane %v508_v3, %v2241_v58  ;;  %v1569_v5 = vpop.f32.mrb[11].mxu0  ;;  %v744_v3 = vld [vmem:[%s2560_s6 + $0x48] sm:$0xff] }
 0x303   :  { %v761_v5 = vld [vmem:[%s2560_s6 + $0xd0] sm:$0xff] }
 0x304   :  { %v2249_v8 = vadd.f32 %v523_v4, %v516_v62  ;;  %v2251_v10 = vadd.f32 %v523_v4, %v517_v63  ;;  %v2253_v11 = vadd.f32 %v523_v4, %v518_v1  ;;  %v2255_v12 = vadd.f32 %v523_v4, %v519_v2  ;;  %v776_v62 = vld [vmem:[%s2560_s6 + $0x148] sm:$0xff]  ;;  %v743_v2 = vld [vmem:[%s2560_s6 + $0x40] sm:$0xff] }
 0x305   :  { %v1830_v63 = vpack.c.bf16 %v742_v56, %v741_v55  ;;  %v1832_v1 = vpack.c.bf16 %v760_v60, %v759_v59  ;;  %v1864_v4 = vpack.c.bf16 %v776_v62, %v775_v61  ;;  %v1834_v16 = vpack.c.bf16 %v744_v3, %v743_v2  ;;  %v964_v55 = vld [vmem:[%s2561_s9 + $0x48] sm:$0xff]  ;;  %v966_v59 = vld [vmem:[%s2561_s9 + $0x58] sm:$0xff]  ;;  %v967_v61 = vld [vmem:[%s2561_s9 + $0x60] sm:$0xff] }
 0x306   :  { %v528_v7 = vmax.f32 %v2249_v8, 0.0  ;;  %v529_v9 = vmax.f32 %v2251_v10, 0.0  ;;  %v530_v13 = vmax.f32 %v2253_v11, 0.0  ;;  %v531_v14 = vmax.f32 %v2255_v12, 0.0  ;;  %v762_v8 = vld [vmem:[%s2560_s6 + $0xd8] sm:$0xff]  ;;  %v955_v10 = vld [vmem:[%s2561_s9] sm:$0xff] }
 0x307   :  { %v1836_v17 = vpack.c.bf16 %v762_v8, %v761_v5  ;;  %v956_v11 = vld [vmem:[%s2561_s9 + $0x8] sm:$0xff]  ;;  %v957_v12 = vld [vmem:[%s2561_s9 + $0x10] sm:$0xff]  ;;  %v970_v2 = vld [vmem:[%s2561_s9 + $0x78] sm:$0xff] }
 0x308   :  { %v1800_v15 = vpack.c.bf16 %v529_v9, %v528_v7  ;;  %v1804_v22 = vpack.c.bf16 %v531_v14, %v530_v13  ;;  %v968_v62 = vld [vmem:[%s2561_s9 + $0x68] sm:$0xff] }
 0x30a   :  { %1801 = vmatprep.subr.bf16.mxu1 %v1800_v15  ;;  %1809 = vmatprep.subr.bf16.mxu0 %v1800_v15 }
 0x30b   :  { %1803 = vmatpush3.bf16.msra.mxu1 %v1800_v15  ;;  %1811 = vmatpush3.bf16.msra.mxu0 %v1800_v15  ;;  %v778_v15 = vld [vmem:[%s2560_s6 + $0x158] sm:$0xff] }
 0x30c   :  { %1805 = vmatprep.subr.bf16.mxu1 %v1804_v22  ;;  %1813 = vmatprep.subr.bf16.mxu0 %v1804_v22 }
 0x30f   :  { %1807 = vmatpush3.bf16.msra.mxu1 %v1804_v22  ;;  %1815 = vmatpush3.bf16.msra.mxu0 %v1804_v22 }
 0x310   :  { %1817 = vmatprep.subr.bf16.mxu1 %v1816_v23  ;;  %1849 = vmatprep.subr.bf16.mxu0 %v1848_v24  ;;  %v763_v23 = vld [vmem:[%s2560_s6 + $0xe0] sm:$0xff] }
 0x312   :  { %1579 = vmatmul.mubr.msk.f32.vlgmr.msra.gmra.mrb[4].mxu1 %vm536_vm3, %v533_v31  ;;  %1593 = vmatmul.mubr.msk.f32.vlgmr.msra.gmra.mrb[12].mxu0 %vm536_vm3, %v635_v32  ;;  %v1872_v31 = vpack.c.bf16 %v780_v26, %v779_v25  ;;  %v765_v32 = vld [vmem:[%s2560_s6 + $0xf0] sm:$0xff] }
 0x313   :  { %1581 = vmatprep.mubr.msk.f32.mxu1 %vm536_vm3, %v534_v33  ;;  %1595 = vmatprep.mubr.msk.f32.mxu0 %vm536_vm3, %v636_v34  ;;  %v766_v33 = vld [vmem:[%s2560_s6 + $0xf8] sm:$0xff]  ;;  %v1842_v34 = vpack.c.bf16 %v748_v30, %v747_v29 }
 0x314   :  { %1819 = vmatpush3.bf16.msra.mxu1 %v1818_v35  ;;  %1851 = vmatpush3.bf16.msra.mxu0 %v1848_v24  ;;  %v764_v24 = vld [vmem:[%s2560_s6 + $0xe8] sm:$0xff]  ;;  %v1844_v35 = vpack.c.bf16 %v766_v33, %v765_v32 }
 0x315   :  { %1821 = vmatprep.subr.bf16.mxu1 %v1820_v20  ;;  %1853 = vmatprep.subr.bf16.mxu0 %v1852_v37  ;;  %v1840_v28 = vpack.c.bf16 %v764_v24, %v763_v23  ;;  %v749_v20 = vld [vmem:[%s2560_s6 + $0x70] sm:$0xff] }
 0x316   :  { %1582 = vmatmul.mubr.msk.f32.gmra.mrb[6].mxu1 %vm536_vm3, %v535_v42  ;;  %1596 = vmatmul.mubr.msk.f32.gmra.mrb[14].mxu0 %vm536_vm3, %v637_v43  ;;  %v1846_v36 = vpack.c.bf16 %v750_v21, %v749_v20 }
 0x317   :  { %847 = vmatprep.mubr.f32.mxu1 %v528_v7  ;;  %v777_v7 = vld [vmem:[%s2560_s6 + $0x150] sm:$0xff] }
 0x318   :  { %1823 = vmatpush3.bf16.msra.mxu1 %v1822_v44  ;;  %1855 = vmatpush3.bf16.msra.mxu0 %v1852_v37  ;;  %v1868_v22 = vpack.c.bf16 %v778_v15, %v777_v7  ;;  %v781_v37 = vld [vmem:[%s2560_s6 + $0x170] sm:$0xff] }
 0x319   :  { %1825 = vmatprep.subr.bf16.mxu1 %v1824_v45  ;;  %1857 = vmatprep.subr.bf16.mxu0 %v1856_v48  ;;  %v1876_v39 = vpack.c.bf16 %v782_v38, %v781_v37 }
 0x31c   :  { %1827 = vmatpush3.bf16.msra.mxu1 %v1826_v53  ;;  %1859 = vmatpush3.bf16.msra.mxu0 %v1856_v48  ;;  %v959_v48 = vld [vmem:[%s2561_s9 + $0x20] sm:$0xff]  ;;  %v1890_v53 = vpack.c.bf16 %v962_v52, %v961_v51 }
 0x31d   :  { %1829 = vmatprep.subr.bf16.mxu1 %v1828_v54  ;;  %1861 = vmatprep.subr.bf16.mxu0 %v1860_v57  ;;  %v1887_v50 = vpack.c.bf16 %v960_v49, %v959_v48  ;;  %v963_v54 = vld [vmem:[%s2561_s9 + $0x40] sm:$0xff] }
 0x31e   :  { %v1893_v56 = vpack.c.bf16 %v964_v55, %v963_v54 }
 0x320   :  { %1831 = vmatpush3.bf16.msra.mxu1 %v1830_v63  ;;  %1863 = vmatpush3.bf16.msra.mxu0 %v1860_v57  ;;  %v965_v57 = vld [vmem:[%s2561_s9 + $0x50] sm:$0xff]  ;;  %v1899_v63 = vpack.c.bf16 %v968_v62, %v967_v61 }
 0x321   :  { %1833 = vmatprep.subr.bf16.mxu1 %v1832_v1  ;;  %1865 = vmatprep.subr.bf16.mxu0 %v1864_v4  ;;  %v1896_v60 = vpack.c.bf16 %v966_v59, %v965_v57  ;;  %v969_v1 = vld [vmem:[%s2561_s9 + $0x70] sm:$0xff] }
 0x322   :  { %v1902_v3 = vpack.c.bf16 %v970_v2, %v969_v1 }
 0x324   :  { %1835 = vmatpush3.bf16.msra.mxu1 %v1834_v16  ;;  %1867 = vmatpush3.bf16.msra.mxu0 %v1864_v4 }
 0x325   :  { %1837 = vmatprep.subr.bf16.mxu1 %v1836_v17  ;;  %1869 = vmatprep.subr.bf16.mxu0 %v1868_v22 }
 0x328   :  { %1839 = vmatpush3.bf16.msra.mxu1 %v1838_v27  ;;  %1871 = vmatpush3.bf16.msra.mxu0 %v1868_v22 }
 0x329   :  { %1841 = vmatprep.subr.bf16.mxu1 %v1840_v28  ;;  %1873 = vmatprep.subr.bf16.mxu0 %v1872_v31 }
 0x32c   :  { %1843 = vmatpush3.bf16.msra.mxu1 %v1842_v34  ;;  %1875 = vmatpush3.bf16.msra.mxu0 %v1872_v31 }
 0x32d   :  { %1845 = vmatprep.subr.bf16.mxu1 %v1844_v35  ;;  %1877 = vmatprep.subr.bf16.mxu0 %v1876_v39 }
 0x330   :  { %1847 = vmatpush3.bf16.msra.mxu1 %v1846_v36  ;;  %1879 = vmatpush3.bf16.msra.mxu0 %v1876_v39 }
 0x331   :  { %1880 = vmatprep.subr.bf16.mxu1 %v1935_v0  ;;  %1904 = vmatprep.subr.bf16.mxu0 %v1935_v0 }
 0x3e5   :  { %v1580_v40 = vpop.f32.mrb[4].mxu1  ;;  %v1594_v41 = vpop.f32.mrb[12].mxu0 }
 0x3e6   :  { %v615_v42 = vpop.f32.mrb[5].mxu1  ;;  %v716_v43 = vpop.f32.mrb[13].mxu0 }
 0x3e7   :  { %848 = vmatmul.mubr.f32.vlgmr.msra.gmra.mrb[8].mxu1 %v615_v42  ;;  %1630 = vmatprep.mubr.f32.mxu0 %v716_v43 }
 0x3e8   :  { %852 = vmatprep.mubr.f32.mxu1 %v529_v9  ;;  %1631 = vmatmul.mubr.f32.vlgmr.msra.gmra.mrb[16].mxu0 %v1594_v41  ;;  %v1881_v9 = vpack.c.bf16 %v956_v11, %v955_v10 }
 0x3e9   :  { %v1583_v44 = vpop.f32.mrb[6].mxu1  ;;  %v1597_v45 = vpop.f32.mrb[14].mxu0 }
 0x3ea   :  { %v625_v46 = vpop.f32.mrb[7].mxu1  ;;  %v726_v47 = vpop.f32.mrb[15].mxu0  ;;  %1882 = vmatpush3.bf16.msra.mxu1 %v1881_v9  ;;  %1906 = vmatpush3.bf16.msra.mxu0 %v1881_v9 }
 0x3eb   :  { %853 = vmatmul.mubr.f32.gmra.mrb[10].mxu1 %v1580_v40  ;;  %1633 = vmatprep.mubr.f32.mxu0 %v726_v47 }
 0x3ec   :  { %857 = vmatprep.mubr.f32.mxu1 %v530_v13  ;;  %1634 = vmatmul.mubr.f32.gmra.mrb[18].mxu0 %v1597_v45  ;;  %v958_v13 = vld [vmem:[%s2561_s9 + $0x18] sm:$0xff] }
 0x3ed   :  { %1703 = vmatprep.mubr.msk.f32.mxu0 %vm1936_vm1, %v1937_v6  ;;  %1883 = vmatprep.subr.bf16.mxu1 %v1935_v0 }
 0x3ee   :  { %1907 = vmatprep.subr.bf16.mxu0 %v1935_v0 }
 0x3ef   :  { %858 = vmatmul.mubr.f32.gmra.mrb[12].mxu1 %v625_v46 }
 0x3f0   :  { %862 = vmatprep.mubr.f32.mxu1 %v531_v14  ;;  %v1884_v14 = vpack.c.bf16 %v958_v13, %v957_v12  ;;  %v971_v13 = vld [vmem:[%s2562_s10] sm:$0xff] }
 0x3f2   :  { %1885 = vmatpush3.bf16.msra.mxu1 %v1884_v14  ;;  %1909 = vmatpush3.bf16.msra.mxu0 %v1884_v14 }
 0x3f3   :  { %863 = vmatmul.mubr.f32.gmra.mrb[14].mxu1 %v1583_v44  ;;  %1886 = vmatprep.subr.bf16.mxu1 %v1935_v0 }
 0x3f4   :  { %1668 = vmatprep.mubr.msk.f32.mxu1 %vm1936_vm1, %v1937_v6  ;;  %1910 = vmatprep.subr.bf16.mxu0 %v1935_v0 }
 0x3f6   :  { %1888 = vmatpush3.bf16.msra.mxu1 %v1887_v50  ;;  %1912 = vmatpush3.bf16.msra.mxu0 %v1887_v50 }
 0x3f7   :  { %1889 = vmatprep.subr.bf16.mxu1 %v1935_v0  ;;  %1913 = vmatprep.subr.bf16.mxu0 %v1935_v0 }
 0x3fa   :  { %1891 = vmatpush3.bf16.msra.mxu1 %v1890_v53  ;;  %1915 = vmatpush3.bf16.msra.mxu0 %v1890_v53 }
 0x3fb   :  { %1892 = vmatprep.subr.bf16.mxu1 %v1935_v0  ;;  %1916 = vmatprep.subr.bf16.mxu0 %v1935_v0 }
 0x3fe   :  { %1894 = vmatpush3.bf16.msra.mxu1 %v1893_v56  ;;  %1918 = vmatpush3.bf16.msra.mxu0 %v1893_v56 }
 0x3ff   :  { %1895 = vmatprep.subr.bf16.mxu1 %v1935_v0  ;;  %1919 = vmatprep.subr.bf16.mxu0 %v1935_v0 }
 0x402   :  { %1897 = vmatpush3.bf16.msra.mxu1 %v1896_v60  ;;  %1921 = vmatpush3.bf16.msra.mxu0 %v1896_v60  ;;  %v954_v60 = vld [vmem:[%s2564_s8] sm:$0x1] }
 0x403   :  { %1898 = vmatprep.subr.bf16.mxu1 %v1935_v0  ;;  %1922 = vmatprep.subr.bf16.mxu0 %v1935_v0 }
 0x406   :  { %1900 = vmatpush3.bf16.msra.mxu1 %v1899_v63  ;;  %1924 = vmatpush3.bf16.msra.mxu0 %v1899_v63 }
 0x407   :  { %1901 = vmatprep.subr.bf16.mxu1 %v1935_v0  ;;  %1925 = vmatprep.subr.bf16.mxu0 %v1935_v0 }
 0x40a   :  { %1903 = vmatpush3.bf16.msra.mxu1 %v1902_v3  ;;  %1927 = vmatpush3.bf16.msra.mxu0 %v1902_v3 }
 0x40b   :  { %1706 = vmatprep.subr.mxu1 %v1937_v6  ;;  %1711 = vmatprep.subr.mxu0 %v1937_v6 }
 0x4ba   :  { %v1420_v4 = vpop.f32.mrb[8].mxu1 }
 0x4bb   :  { %v1421_v5 = vpop.f32.mrb[9].mxu1  ;;  %v1632_v8 = vpop.f32.mrb[16].mxu0 }
 0x4bc   :  { %v1422_v7 = vadd.f32 %v1421_v5, %v1420_v4  ;;  %v934_v15 = vpop.f32.mrb[17].mxu0 }
 0x4be   :  { %v2511_v16 = vadd.f32 %v1422_v7, %v934_v15  ;;  %v1423_v17 = vpop.f32.mrb[10].mxu1 }
 0x4bf   :  { %v1424_v18 = vpop.f32.mrb[11].mxu1  ;;  %v1635_v19 = vpop.f32.mrb[18].mxu0 }
 0x4c0   :  { %v1425_v22 = vadd.f32 %v1424_v18, %v1423_v17  ;;  %v944_v23 = vpop.f32.mrb[19].mxu0  ;;  %v981_v31 = vmul.f32 %v2511_v16, %v2511_v16 }
 0x4c2   :  { %v2513_v0 = vadd.f32 %v1632_v8, %v1425_v22  ;;  %v1426_v24 = vpop.f32.mrb[12].mxu1 }
 0x4c3   :  { %v1427_v25 = vpop.f32.mrb[13].mxu1 }
 0x4c4   :  { %v1428_v26 = vadd.f32 %v1427_v25, %v1426_v24  ;;  %v982_v27 = vmul.f32 %v2513_v0, %v2513_v0  ;;  %v972_v32 = vadd.f32 %v2513_v0, %v2511_v16 }
 0x4c6   :  { %v945_v28 = vadd.f32 %v1428_v26, %v944_v23  ;;  %v1429_v29 = vpop.f32.mrb[14].mxu1  ;;  %v985_v20 = vadd.f32 %v982_v27, %v981_v31 }
 0x4c7   :  { %v1430_v30 = vpop.f32.mrb[15].mxu1 }
 0x4c8   :  { %v983_v33 = vmul.f32 %v945_v28, %v945_v28  ;;  %v1431_v34 = vadd.f32 %v1430_v30, %v1429_v29  ;;  %v973_v35 = vadd.f32 %v972_v32, %v945_v28 }
 0x4ca   :  { %v950_v21 = vadd.f32 %v1635_v19, %v1431_v34  ;;  %v986_v36 = vadd.f32 %v985_v20, %v983_v33 }
 0x4cc   :  { %v974_v37 = vadd.f32 %v973_v35, %v950_v21  ;;  %v984_v38 = vmul.f32 %v950_v21, %v950_v21 }
 0x4ce   :  { %v975_v39 = vrot.slane %v974_v37, 4  ;;  %v987_v40 = vadd.f32 %v986_v36, %v984_v38 }
 0x4d0   :  { %v976_v41 = vadd.f32 %v975_v39, %v974_v37  ;;  %v988_v42 = vrot.slane %v987_v40, 4 }
 0x4d2   :  { %v977_v43 = vrot.slane %v976_v41, 2  ;;  %v989_v44 = vadd.f32 %v988_v42, %v987_v40 }
 0x4d4   :  { %v978_v45 = vadd.f32 %v977_v43, %v976_v41  ;;  %v990_v46 = vrot.slane %v989_v44, 2 }
 0x4d6   :  { %v979_v47 = vrot.slane %v978_v45, 1  ;;  %v991_v10 = vadd.f32 %v990_v46, %v989_v44 }
 0x4d8   :  { %v980_v11 = vadd.f32 %v979_v47, %v978_v45  ;;  %v992_v9 = vrot.slane %v991_v10, 1 }
 0x4da   :  { %1669 = vmatmul.mubr.f32.vlgmr.msra.gmra.mrb[16].mxu1 %v980_v11  ;;  %v993_v12 = vadd.f32 %v992_v9, %v991_v10 }
 0x4db   :  { %1708 = vmatprep.mubr.msk.f32.mxu1 %vm1936_vm1, %v1937_v6  ;;  %1707 = vmatpush3.msra.mxu1 %v971_v13 }
 0x4dc   :  { %1704 = vmatmul.mubr.f32.vlgmr.msra.gmra.mrb[20].mxu0 %v993_v12 }
 0x4dd   :  { %1713 = vmatprep.mubr.msk.f32.mxu0 %vm1936_vm1, %v1937_v6  ;;  %1712 = vmatpush3.msra.mxu0 %v971_v13  ;;  %v953_v6 = vld [vmem:[%s2563_s7] sm:$0x1] }
 0x5ad   :  { %v1060_v14 = vpop.f32.mrb[16].mxu1 }
 0x5ae   :  { %v1064_v48 = vmul.f32 0.001953125, %v1060_v14  ;;  %v1670_v49 = vpop.f32.mrb[17].mxu1 }
 0x5af   :  { %v1131_v50 = vpop.f32.mrb[20].mxu0 }
 0x5b0   :  { %v1136_v51 = vmul.f32 %v1064_v48, %v1064_v48  ;;  %v1135_v52 = vmul.f32 0.001953125, %v1131_v50  ;;  %v1705_v53 = vpop.f32.mrb[21].mxu0 }
 0x5b2   :  { %v1137_v54 = vsub.f32 %v1135_v52, %v1136_v51 }
 0x5b4   :  { %v1138_v55 = vmax.f32 %v1137_v54, 0.0 }
 0x5b6   :  { %v1139_v56 = vadd.f32 1e-05, %v1138_v55 }
 0x5b8   :  { %1933 = vrsqrt.f32 %v1139_v56 }
 0x5c2   :  { %v1934_v57 = vpop.eup %1933 }
 0x5c3   :  { %v1141_v59 = vmul.f32 %v1934_v57, %v953_v6 }
 0x5c5   :  { %1709 = vmatmul.mubr.msk.f32.vlgmr.msra.gmra.mrb[18].mxu1 %vm365_vm2, %v1141_v59  ;;  %v1142_v61 = vmul.f32 %v1141_v59, %v1064_v48 }
 0x5c7   :  { %v1143_v62 = vsub.f32 %v954_v60, %v1142_v61 }
 0x5c9   :  { %1714 = vmatmul.mubr.msk.f32.vlgmr.msra.gmra.mrb[22].mxu0 %vm365_vm2, %v1143_v62 }
 0x698   :  { %v1213_v63 = vpop.f32.mrb[18].mxu1 }
 0x699   :  { %v1293_v1 = vrot.slane %v1213_v63, %v2241_v58  ;;  %v1710_v2 = vpop.f32.mrb[19].mxu1 }
 0x69b   :  { %v1294_v3 = vmul.f32 %v1293_v1, %v2511_v16  ;;  %v1295_v5 = vmul.f32 %v1293_v1, %v2513_v0  ;;  %v1296_v8 = vmul.f32 %v1293_v1, %v945_v28  ;;  %v1297_v7 = vmul.f32 %v1293_v1, %v950_v21 }
 0x69c   :  { %v1286_v4 = vpop.f32.mrb[22].mxu0 }
 0x69d   :  { %v1301_v15 = vrot.slane %v1286_v4, %v2241_v58  ;;  %v1715_v17 = vpop.f32.mrb[23].mxu0 }
 0x69f   :  { %v1302_v18 = vadd.f32 %v1301_v15, %v1294_v3  ;;  %v1303_v19 = vadd.f32 %v1301_v15, %v1295_v5  ;;  %v1304_v22 = vadd.f32 %v1301_v15, %v1296_v8  ;;  %v1305_v23 = vadd.f32 %v1301_v15, %v1297_v7 }
 0x6a1   :  { %v1306_v24 = vmax.f32 %v1302_v18, 0.0  ;;  %v1307_v25 = vmax.f32 %v1303_v19, 0.0  ;;  %v1308_v26 = vmax.f32 %v1304_v22, 0.0  ;;  %v1309_v27 = vmax.f32 %v1305_v23, 0.0 }
 0x6a3   :  { %1310 = vst [vmem:[%s2565_s13] sm:$0xff] %v1306_v24  ;;  %1311 = vst [vmem:[%s2565_s13 + $0x8] sm:$0xff] %v1307_v25 }
 0x6a4   :  { %1312 = vst [vmem:[%s2565_s13 + $0x10] sm:$0xff] %v1308_v26  ;;  %1313 = vst [vmem:[%s2565_s13 + $0x18] sm:$0xff] %v1309_v27 }

</bundles_post_ra>
